<compile_context>
chip_gen: v5e
topology: v5e:2x2
jax: 0.10.0
libtpu: 0.0.40
codegen_flags: <defaults>
</compile_context>

<pallas_src>
import functools

import jax
import jax.numpy as jnp
from jax.experimental import pallas as pl
from jax.experimental.pallas import tpu as pltpu

OUT_STEPS = 5  # fc(forecaster_o[:, :5, :])


def _forecaster_kernel(
    x_ref,        # (n_out*B, F)   time-major flattened (truncated) input
    wih_e_ref,    # (F, He)        encoder W_ih^T
    whh_e_ref,    # (He, He)       encoder W_hh^T
    be_ref,       # (1, He)        encoder b_ih + b_hh
    wih_f_ref,    # (He, Hf)       forecaster W_ih^T
    whh_f_ref,    # (Hf, Hf)       forecaster W_hh^T
    bf_ref,       # (1, Hf)        forecaster b_ih + b_hh
    wfc_ref,      # (Hf, O)        fc weight^T
    bfc_ref,      # (1, O)         fc bias
    out_ref,      # (n_out*B, O)   time-major flattened output
    *,
    batch,
    n_out,
):
    B = batch

    # Hoisted loads.  Serial-chain operands are cast to bf16 once so every
    # per-step dot lowers to a single MXU pass; accumulation stays f32 via
    # preferred_element_type.
    whh_e = whh_e_ref[...].astype(jnp.bfloat16)
    whh_f = whh_f_ref[...].astype(jnp.bfloat16)
    wih_f = wih_f_ref[...].astype(jnp.bfloat16)
    bf = bf_ref[...]

    # Off-critical-path batched encoder input projection (one MXU matmul),
    # kept as a vreg-resident value — no VMEM scratch round trip.
    xproj = (
        jnp.dot(x_ref[...], wih_e_ref[...], preferred_element_type=jnp.float32)
        + be_ref[...]
    )

    # Interleaved encoder/forecaster recurrences, statically unrolled
    # (n_out <= 5).  Only h @ W sits on each serial chain; forecaster step t
    # consumes encoder state t immediately, so the two chains pipeline.
    h_f_steps = []
    h_e_b = None   # encoder hidden state, bf16 (fed to two dots per step)
    h_f_b = None   # forecaster hidden state, bf16
    for t in range(n_out):
        xp_t = xproj[t * B:(t + 1) * B, :]
        if t == 0:
            pre_e = xp_t                                  # h0 == 0: skip matmul
        else:
            pre_e = xp_t + jnp.dot(
                h_e_b, whh_e, preferred_element_type=jnp.float32)
        h_e_b = jnp.tanh(pre_e).astype(jnp.bfloat16)

        fp_t = (
            jnp.dot(h_e_b, wih_f, preferred_element_type=jnp.float32) + bf
        )
        if t == 0:
            pre_f = fp_t                                  # h0 == 0: skip matmul
        else:
            pre_f = fp_t + jnp.dot(
                h_f_b, whh_f, preferred_element_type=jnp.float32)
        h_f = jnp.tanh(pre_f)                             # keep f32 for the fc
        h_f_b = h_f.astype(jnp.bfloat16)
        h_f_steps.append(h_f)

    # One batched fc matmul + a single output store.
    hf_all = jnp.concatenate(h_f_steps, axis=0)           # (n_out*B, Hf)
    y = (
        jnp.dot(hf_all, wfc_ref[...], preferred_element_type=jnp.float32)
        + bfc_ref[...]
    )
    out_ref[...] = y.astype(out_ref.dtype)


@jax.jit
def forecaster_fc_forward(x, params):
    """x: (B, T, F) batch-first, like the PyTorch module. Returns (B, min(T,5), O)."""
    B, T, F = x.shape
    He = params["wih_e"].shape[0]
    Hf = params["wih_f"].shape[0]
    O = params["w_fc"].shape[0]
    n_out = min(T, OUT_STEPS)

    # Encoder truncation: only the first n_out input steps can influence the
    # output (unidirectional RNN causality).  Time-major, flattened so the
    # encoder input projection is one batched MXU matmul inside the kernel.
    x2d = (
        jnp.transpose(x[:, :n_out, :], (1, 0, 2))
        .reshape(n_out * B, F)
        .astype(jnp.float32)
    )

    wih_e_T = params["wih_e"].T                       # (F, He)
    whh_e_T = params["whh_e"].T                       # (He, He)
    be = (params["bih_e"] + params["bhh_e"]).reshape(1, He)
    wih_f_T = params["wih_f"].T                       # (He, Hf)
    whh_f_T = params["whh_f"].T                       # (Hf, Hf)
    bf = (params["bih_f"] + params["bhh_f"]).reshape(1, Hf)
    wfc_T = params["w_fc"].T                          # (Hf, O)
    bfc = params["b_fc"].reshape(1, O)

    kernel = functools.partial(_forecaster_kernel, batch=B, n_out=n_out)

    vmem = pltpu.MemorySpace.VMEM
    out_tmajor = pl.pallas_call(
        kernel,
        out_shape=jax.ShapeDtypeStruct((n_out * B, O), jnp.float32),
        # No grid: one invocation; the whole working set is a few KB of VMEM.
        # (For large B, add a batch-parallel grid axis to use both v7x TCs.)
        in_specs=[pl.BlockSpec(memory_space=vmem)] * 9,
        out_specs=pl.BlockSpec(memory_space=vmem),
    )(x2d, wih_e_T, whh_e_T, be, wih_f_T, whh_f_T, bf, wfc_T, bfc)

    # (n_out*B, O) time-major -> (B, n_out, O) batch-first (tiny wrapper op).
    return jnp.transpose(out_tmajor.reshape(n_out, B, O), (1, 0, 2))


def init_params(key, input_features, enc_hidden, for_hidden, output_size):
    """Deterministic init mimicking PyTorch nn.RNN / nn.Linear default U(-k, k)."""
    ks = jax.random.split(key, 10)

    def u(k, shape, bound):
        return jax.random.uniform(k, shape, jnp.float32, -bound, bound)

    ke = 1.0 / jnp.sqrt(enc_hidden)
    kf = 1.0 / jnp.sqrt(for_hidden)
    kl = 1.0 / jnp.sqrt(for_hidden)
    return {
        "wih_e": u(ks[0], (enc_hidden, input_features), ke),
        "whh_e": u(ks[1], (enc_hidden, enc_hidden), ke),
        "bih_e": u(ks[2], (enc_hidden,), ke),
        "bhh_e": u(ks[3], (enc_hidden,), ke),
        "wih_f": u(ks[4], (for_hidden, enc_hidden), kf),
        "whh_f": u(ks[5], (for_hidden, for_hidden), kf),
        "bih_f": u(ks[6], (for_hidden,), kf),
        "bhh_f": u(ks[7], (for_hidden,), kf),
        "w_fc": u(ks[8], (output_size, for_hidden), kl),
        "b_fc": u(ks[9], (output_size,), kl),
    }


def _rnn_ref(x, wih, whh, bih, bhh):
    """Pure-JAX f32 reference of PyTorch nn.RNN (tanh, batch_first, h0=0)."""
    B = x.shape[0]
    H = wih.shape[0]

    def step(h, xt):
        h = jnp.tanh(xt @ wih.T + bih + h @ whh.T + bhh)
        return h, h

    _, ys = jax.lax.scan(step, jnp.zeros((B, H), jnp.float32),
                         jnp.transpose(x, (1, 0, 2)))
    return jnp.transpose(ys, (1, 0, 2))


def _forward_ref(x, p):
    enc_o = _rnn_ref(x, p["wih_e"], p["whh_e"], p["bih_e"], p["bhh_e"])
    for_o = _rnn_ref(enc_o, p["wih_f"], p["whh_f"], p["bih_f"], p["bhh_f"])
    return for_o[:, :OUT_STEPS, :] @ p["w_fc"].T + p["b_fc"]


if __name__ == "__main__":
    # Small shapes consistent with the module's forward.
    B, T = 2, 8
    input_features = 4
    encoder_hidden_features = 32
    forecaster_hidden_features = 32
    output_size = 8

    key = jax.random.PRNGKey(0)
    kx, kp = jax.random.split(key)
    x = jax.random.normal(kx, (B, T, input_features), jnp.float32)
    params = init_params(kp, input_features, encoder_hidden_features,
                         forecaster_hidden_features, output_size)

    out = forecaster_fc_forward(x, params)
    out = jax.block_until_ready(out)

    ref = _forward_ref(x, params)
    assert out.shape == (B, OUT_STEPS, output_size), out.shape
    # Loosened tolerance vs. the pure-f32 reference: the serial-chain matmuls
    # intentionally run as single-pass bf16 MXU ops (per the perf review).
    assert jnp.allclose(out, ref, atol=5e-2, rtol=5e-2), (
        float(jnp.max(jnp.abs(out - ref))))

    print("KERNEL_OK")
</pallas_src>

<mosaic_0001>
module attributes {stable_mosaic.version = 11 : i64} {
  func.func @_forecaster_kernel(%arg0: memref<10x4xf32, #tpu.memory_space<vmem>>, %arg1: memref<4x32xf32, #tpu.memory_space<vmem>>, %arg2: memref<32x32xf32, #tpu.memory_space<vmem>>, %arg3: memref<1x32xf32, #tpu.memory_space<vmem>>, %arg4: memref<32x32xf32, #tpu.memory_space<vmem>>, %arg5: memref<32x32xf32, #tpu.memory_space<vmem>>, %arg6: memref<1x32xf32, #tpu.memory_space<vmem>>, %arg7: memref<32x8xf32, #tpu.memory_space<vmem>>, %arg8: memref<1x8xf32, #tpu.memory_space<vmem>>, %arg9: memref<10x8xf32, #tpu.memory_space<vmem>>) attributes {dimension_semantics = [], scalar_prefetch = 0 : i64, scratch_operands = 0 : i64, tpu.core_type = #tpu.core_type<tc>} {
    %c0 = arith.constant 0 : index
    %c0_0 = arith.constant 0 : index
    %0 = vector.load %arg2[%c0, %c0_0] : memref<32x32xf32, #tpu.memory_space<vmem>>, vector<32x32xf32>
    %1 = arith.truncf %0 : vector<32x32xf32> to vector<32x32xbf16>
    %c0_1 = arith.constant 0 : index
    %c0_2 = arith.constant 0 : index
    %2 = vector.load %arg5[%c0_1, %c0_2] : memref<32x32xf32, #tpu.memory_space<vmem>>, vector<32x32xf32>
    %3 = arith.truncf %2 : vector<32x32xf32> to vector<32x32xbf16>
    %c0_3 = arith.constant 0 : index
    %c0_4 = arith.constant 0 : index
    %4 = vector.load %arg4[%c0_3, %c0_4] : memref<32x32xf32, #tpu.memory_space<vmem>>, vector<32x32xf32>
    %5 = arith.truncf %4 : vector<32x32xf32> to vector<32x32xbf16>
    %c0_5 = arith.constant 0 : index
    %c0_6 = arith.constant 0 : index
    %6 = vector.load %arg6[%c0_5, %c0_6] : memref<1x32xf32, #tpu.memory_space<vmem>>, vector<1x32xf32>
    %c0_7 = arith.constant 0 : index
    %c0_8 = arith.constant 0 : index
    %7 = vector.load %arg0[%c0_7, %c0_8] : memref<10x4xf32, #tpu.memory_space<vmem>>, vector<10x4xf32>
    %c0_9 = arith.constant 0 : index
    %c0_10 = arith.constant 0 : index
    %8 = vector.load %arg1[%c0_9, %c0_10] : memref<4x32xf32, #tpu.memory_space<vmem>>, vector<4x32xf32>
    %cst = arith.constant dense<0.000000e+00> : vector<10x32xf32>
    %9 = tpu.matmul %7, %8, %cst {dimension_numbers = #tpu.dot_dimension_numbers<[1], [0], [0], [1], [0, 0, 1, 1], [], []>} : vector<10x4xf32>, vector<4x32xf32>, vector<10x32xf32> -> vector<10x32xf32>
    %c0_11 = arith.constant 0 : index
    %c0_12 = arith.constant 0 : index
    %10 = vector.load %arg3[%c0_11, %c0_12] : memref<1x32xf32, #tpu.memory_space<vmem>>, vector<1x32xf32>
    %11 = vector.broadcast %10 : vector<1x32xf32> to vector<10x32xf32>
    %12 = arith.addf %9, %11 : vector<10x32xf32>
    %13 = vector.extract_strided_slice %12 {offsets = [0, 0], sizes = [2, 32], strides = [1, 1]} : vector<10x32xf32> to vector<2x32xf32>
    %14 = math.tanh %13 : vector<2x32xf32>
    %15 = arith.truncf %14 : vector<2x32xf32> to vector<2x32xbf16>
    %cst_13 = arith.constant dense<0.000000e+00> : vector<2x32xf32>
    %16 = tpu.matmul %15, %5, %cst_13 {dimension_numbers = #tpu.dot_dimension_numbers<[1], [0], [0], [1], [0, 0, 1, 1], [], []>} : vector<2x32xbf16>, vector<32x32xbf16>, vector<2x32xf32> -> vector<2x32xf32>
    %17 = vector.broadcast %6 : vector<1x32xf32> to vector<2x32xf32>
    %18 = arith.addf %16, %17 : vector<2x32xf32>
    %19 = math.tanh %18 : vector<2x32xf32>
    %20 = arith.truncf %19 : vector<2x32xf32> to vector<2x32xbf16>
    %21 = vector.extract_strided_slice %12 {offsets = [2, 0], sizes = [2, 32], strides = [1, 1]} : vector<10x32xf32> to vector<2x32xf32>
    %cst_14 = arith.constant dense<0.000000e+00> : vector<2x32xf32>
    %22 = tpu.matmul %15, %1, %cst_14 {dimension_numbers = #tpu.dot_dimension_numbers<[1], [0], [0], [1], [0, 0, 1, 1], [], []>} : vector<2x32xbf16>, vector<32x32xbf16>, vector<2x32xf32> -> vector<2x32xf32>
    %23 = arith.addf %21, %22 : vector<2x32xf32>
    %24 = math.tanh %23 : vector<2x32xf32>
    %25 = arith.truncf %24 : vector<2x32xf32> to vector<2x32xbf16>
    %cst_15 = arith.constant dense<0.000000e+00> : vector<2x32xf32>
    %26 = tpu.matmul %25, %5, %cst_15 {dimension_numbers = #tpu.dot_dimension_numbers<[1], [0], [0], [1], [0, 0, 1, 1], [], []>} : vector<2x32xbf16>, vector<32x32xbf16>, vector<2x32xf32> -> vector<2x32xf32>
    %27 = vector.broadcast %6 : vector<1x32xf32> to vector<2x32xf32>
    %28 = arith.addf %26, %27 : vector<2x32xf32>
    %cst_16 = arith.constant dense<0.000000e+00> : vector<2x32xf32>
    %29 = tpu.matmul %20, %3, %cst_16 {dimension_numbers = #tpu.dot_dimension_numbers<[1], [0], [0], [1], [0, 0, 1, 1], [], []>} : vector<2x32xbf16>, vector<32x32xbf16>, vector<2x32xf32> -> vector<2x32xf32>
    %30 = arith.addf %28, %29 : vector<2x32xf32>
    %31 = math.tanh %30 : vector<2x32xf32>
    %32 = arith.truncf %31 : vector<2x32xf32> to vector<2x32xbf16>
    %33 = vector.extract_strided_slice %12 {offsets = [4, 0], sizes = [2, 32], strides = [1, 1]} : vector<10x32xf32> to vector<2x32xf32>
    %cst_17 = arith.constant dense<0.000000e+00> : vector<2x32xf32>
    %34 = tpu.matmul %25, %1, %cst_17 {dimension_numbers = #tpu.dot_dimension_numbers<[1], [0], [0], [1], [0, 0, 1, 1], [], []>} : vector<2x32xbf16>, vector<32x32xbf16>, vector<2x32xf32> -> vector<2x32xf32>
    %35 = arith.addf %33, %34 : vector<2x32xf32>
    %36 = math.tanh %35 : vector<2x32xf32>
    %37 = arith.truncf %36 : vector<2x32xf32> to vector<2x32xbf16>
    %cst_18 = arith.constant dense<0.000000e+00> : vector<2x32xf32>
    %38 = tpu.matmul %37, %5, %cst_18 {dimension_numbers = #tpu.dot_dimension_numbers<[1], [0], [0], [1], [0, 0, 1, 1], [], []>} : vector<2x32xbf16>, vector<32x32xbf16>, vector<2x32xf32> -> vector<2x32xf32>
    %39 = vector.broadcast %6 : vector<1x32xf32> to vector<2x32xf32>
    %40 = arith.addf %38, %39 : vector<2x32xf32>
    %cst_19 = arith.constant dense<0.000000e+00> : vector<2x32xf32>
    %41 = tpu.matmul %32, %3, %cst_19 {dimension_numbers = #tpu.dot_dimension_numbers<[1], [0], [0], [1], [0, 0, 1, 1], [], []>} : vector<2x32xbf16>, vector<32x32xbf16>, vector<2x32xf32> -> vector<2x32xf32>
    %42 = arith.addf %40, %41 : vector<2x32xf32>
    %43 = math.tanh %42 : vector<2x32xf32>
    %44 = arith.truncf %43 : vector<2x32xf32> to vector<2x32xbf16>
    %45 = vector.extract_strided_slice %12 {offsets = [6, 0], sizes = [2, 32], strides = [1, 1]} : vector<10x32xf32> to vector<2x32xf32>
    %cst_20 = arith.constant dense<0.000000e+00> : vector<2x32xf32>
    %46 = tpu.matmul %37, %1, %cst_20 {dimension_numbers = #tpu.dot_dimension_numbers<[1], [0], [0], [1], [0, 0, 1, 1], [], []>} : vector<2x32xbf16>, vector<32x32xbf16>, vector<2x32xf32> -> vector<2x32xf32>
    %47 = arith.addf %45, %46 : vector<2x32xf32>
    %48 = math.tanh %47 : vector<2x32xf32>
    %49 = arith.truncf %48 : vector<2x32xf32> to vector<2x32xbf16>
    %cst_21 = arith.constant dense<0.000000e+00> : vector<2x32xf32>
    %50 = tpu.matmul %49, %5, %cst_21 {dimension_numbers = #tpu.dot_dimension_numbers<[1], [0], [0], [1], [0, 0, 1, 1], [], []>} : vector<2x32xbf16>, vector<32x32xbf16>, vector<2x32xf32> -> vector<2x32xf32>
    %51 = vector.broadcast %6 : vector<1x32xf32> to vector<2x32xf32>
    %52 = arith.addf %50, %51 : vector<2x32xf32>
    %cst_22 = arith.constant dense<0.000000e+00> : vector<2x32xf32>
    %53 = tpu.matmul %44, %3, %cst_22 {dimension_numbers = #tpu.dot_dimension_numbers<[1], [0], [0], [1], [0, 0, 1, 1], [], []>} : vector<2x32xbf16>, vector<32x32xbf16>, vector<2x32xf32> -> vector<2x32xf32>
    %54 = arith.addf %52, %53 : vector<2x32xf32>
    %55 = math.tanh %54 : vector<2x32xf32>
    %56 = arith.truncf %55 : vector<2x32xf32> to vector<2x32xbf16>
    %57 = vector.extract_strided_slice %12 {offsets = [8, 0], sizes = [2, 32], strides = [1, 1]} : vector<10x32xf32> to vector<2x32xf32>
    %cst_23 = arith.constant dense<0.000000e+00> : vector<2x32xf32>
    %58 = tpu.matmul %49, %1, %cst_23 {dimension_numbers = #tpu.dot_dimension_numbers<[1], [0], [0], [1], [0, 0, 1, 1], [], []>} : vector<2x32xbf16>, vector<32x32xbf16>, vector<2x32xf32> -> vector<2x32xf32>
    %59 = arith.addf %57, %58 : vector<2x32xf32>
    %60 = math.tanh %59 : vector<2x32xf32>
    %61 = arith.truncf %60 : vector<2x32xf32> to vector<2x32xbf16>
    %cst_24 = arith.constant dense<0.000000e+00> : vector<2x32xf32>
    %62 = tpu.matmul %61, %5, %cst_24 {dimension_numbers = #tpu.dot_dimension_numbers<[1], [0], [0], [1], [0, 0, 1, 1], [], []>} : vector<2x32xbf16>, vector<32x32xbf16>, vector<2x32xf32> -> vector<2x32xf32>
    %63 = vector.broadcast %6 : vector<1x32xf32> to vector<2x32xf32>
    %64 = arith.addf %62, %63 : vector<2x32xf32>
    %cst_25 = arith.constant dense<0.000000e+00> : vector<2x32xf32>
    %65 = tpu.matmul %56, %3, %cst_25 {dimension_numbers = #tpu.dot_dimension_numbers<[1], [0], [0], [1], [0, 0, 1, 1], [], []>} : vector<2x32xbf16>, vector<32x32xbf16>, vector<2x32xf32> -> vector<2x32xf32>
    %66 = arith.addf %64, %65 : vector<2x32xf32>
    %67 = math.tanh %66 : vector<2x32xf32>
    %68 = tpu.concatenate %19, %31, %43, %55, %67 in 0 : vector<2x32xf32>, vector<2x32xf32>, vector<2x32xf32>, vector<2x32xf32>, vector<2x32xf32> -> vector<10x32xf32>
    %c0_26 = arith.constant 0 : index
    %c0_27 = arith.constant 0 : index
    %69 = vector.load %arg7[%c0_26, %c0_27] : memref<32x8xf32, #tpu.memory_space<vmem>>, vector<32x8xf32>
    %cst_28 = arith.constant dense<0.000000e+00> : vector<10x8xf32>
    %70 = tpu.matmul %68, %69, %cst_28 {dimension_numbers = #tpu.dot_dimension_numbers<[1], [0], [0], [1], [0, 0, 1, 1], [], []>} : vector<10x32xf32>, vector<32x8xf32>, vector<10x8xf32> -> vector<10x8xf32>
    %c0_29 = arith.constant 0 : index
    %c0_30 = arith.constant 0 : index
    %71 = vector.load %arg8[%c0_29, %c0_30] : memref<1x8xf32, #tpu.memory_space<vmem>>, vector<1x8xf32>
    %72 = vector.broadcast %71 : vector<1x8xf32> to vector<10x8xf32>
    %73 = arith.addf %70, %72 : vector<10x8xf32>
    %c0_31 = arith.constant 0 : index
    %c0_32 = arith.constant 0 : index
    %74 = vector.load %arg9[%c0_31, %c0_32] : memref<10x8xf32, #tpu.memory_space<vmem>>, vector<10x8xf32>
    tpu.vector_store %arg9[%c0_31, %c0_32], %73 {strides = array<i32>} : memref<10x8xf32, #tpu.memory_space<vmem>>, vector<10x8xf32>,
    return
  }
}

</mosaic_0001>

<bundles_post_ra>
// kernel: forecaster_fc_forward.1
= control target key start
LH: loop header
LB: loop body
LE: loop exit
PB: predicated region body
PF: predicated region fallthrough
CT: control target
= control target key end

     0   :  { %vm66_vm0 = vcmask 1043456   ;;  %vm59_vm1 = vcmask 31744   ;;  %vm98_vm2 = vcmask 261120   ;;  %vm344_vm3 = vcmask 1041408   ;;  %s599_s1 = inlined_call_operand.vmem [shape: f32[4,32], index: 1, kind: input, shape index: {}]   ;;  %s600_s0 = inlined_call_operand.vmem [shape: f32[10,4], index: 0, kind: input, shape index: {}]   ;;  %s601_s3 = inlined_call_operand.vmem [shape: f32[1,32], index: 3, kind: input, shape index: {}]   ;;  %s602_s6 = inlined_call_operand.vmem [shape: f32[1,32], index: 6, kind: input, shape index: {}]   ;;  %s603_s4 = inlined_call_operand.vmem [shape: f32[32,32], index: 4, kind: input, shape index: {}]   ;;  %s604_s2 = inlined_call_operand.vmem [shape: f32[32,32], index: 2, kind: input, shape index: {}]   ;;  %s605_s5 = inlined_call_operand.vmem [shape: f32[32,32], index: 5, kind: input, shape index: {}]   ;;  %s606_s7 = inlined_call_operand.vmem [shape: f32[32,8], index: 7, kind: input, shape index: {}]   ;;  %s607_s8 = inlined_call_operand.vmem [shape: f32[1,8], index: 8, kind: input, shape index: {}]   ;;  %s608_s9 = inlined_call_operand.vmem [shape: f32[10,8], index: 9, kind: output, shape index: {}]  }
   0x1   :  { %v54_v0 = vld [vmem:[%s599_s1] sm:$0xf]  ;;  %v47_v2 = vld [vmem:[%s603_s4 + $0x10] sm:$0xff]  ;;  %v48_v3 = vld [vmem:[%s603_s4 + $0x18] sm:$0xff]  ;;  %vm347_vm4 = vcmask 1045504   ;;  %vm386_vm5 = vcmask 64512  }
   0x2   :  { %v52_v1 = vld [vmem:[%s600_s0] sm:$0xff]  ;;  %394 = vmatpush.msk.msra.mxu0 %vm66_vm0, %v54_v0  ;;  %v35_v4 = vld [vmem:[%s604_s2 + $0x10] sm:$0xff]  ;;  %v50_v5 = vpack.c.bf16 %v48_v3, %v47_v2  ;;  %v36_v6 = vld [vmem:[%s604_s2 + $0x18] sm:$0xff]  ;;  %vm388_vm6 = vcmask 58368  }
   0x3   :  { %395 = vmatmul.msk.f32.vlgmr.msra.gmra.mxu0 %vm59_vm1, %v52_v1  ;;  %v45_v7 = vld [vmem:[%s603_s4] sm:$0xff]  ;;  %v46_v8 = vld [vmem:[%s603_s4 + $0x8] sm:$0xff]  ;;  %v511_v9 = vpack.c.bf16 %v36_v6, %v35_v4  ;;  %v41_v19 = vld [vmem:[%s605_s5 + $0x10] sm:$0xff] }
   0x4   :  { %v33_v10 = vld [vmem:[%s604_s2] sm:$0xff]  ;;  %v34_v11 = vld [vmem:[%s604_s2 + $0x8] sm:$0xff]  ;;  %108 = vmatpush.bf16.msra.mxu1 %v50_v5  ;;  %v49_v12 = vpack.c.bf16 %v46_v8, %v45_v7  ;;  %147 = vmatpush.bf16.msra.mxu3 %v50_v5  ;;  %v42_v20 = vld [vmem:[%s605_s5 + $0x18] sm:$0xff] }
   0x5   :  { %123 = vmatpush.bf16.msra.mxu2 %v511_v9  ;;  %v37_v13 = vpack.c.bf16 %v34_v11, %v33_v10  ;;  %v524_v14 = vld [vmem:[%s601_s3] ss:$0 sm:$0xff]  ;;  %v53_v21 = vld [vmem:[%s600_s0 + $0x8] sm:$0x3]  ;;  %v44_v22 = vpack.c.bf16 %v42_v20, %v41_v19  ;;  %v352_v10 = vld [vmem:[%s606_s7 + $0x18] sm:$0xff] }
   0x6   :  { %v39_v23 = vld [vmem:[%s605_s5] sm:$0xff]  ;;  %v40_v24 = vld [vmem:[%s605_s5 + $0x8] sm:$0xff]  ;;  %v351_v11 = vld [vmem:[%s606_s7 + $0x10] sm:$0xff] }
   0x7   :  { %163 = vmatpush.bf16.msrb.mxu0 %v44_v22  ;;  %v43_v25 = vpack.c.bf16 %v40_v24, %v39_v23  ;;  %v552_v26 = vld [vmem:[%s602_s6] ss:$0 sm:$0xff] }
   0x8   :  { %109 = vmatpush.bf16.msra.mxu1 %v49_v12  ;;  %148 = vmatpush.bf16.msra.mxu3 %v49_v12 }
   0x9   :  { %124 = vmatpush.bf16.msra.mxu2 %v37_v13 }
   0xb   :  { %396 = vmatmul.msk.f32.gmra.mxu0 %vm59_vm1, %v53_v21 }
   0xc   :  { %179 = vmatpush.bf16.msrb.mxu1 %v511_v9  ;;  %219 = vmatpush.bf16.msrb.mxu3 %v44_v22 }
   0xd   :  { %203 = vmatpush.bf16.msrb.mxu2 %v50_v5  ;;  %164 = vmatpush.bf16.msrb.mxu0 %v43_v25 }
  0x10   :  { %180 = vmatpush.bf16.msrb.mxu1 %v37_v13  ;;  %220 = vmatpush.bf16.msrb.mxu3 %v43_v25 }
  0x11   :  { %204 = vmatpush.bf16.msrb.mxu2 %v49_v12  ;;  %235 = vmatpush.bf16.msra.mxu0 %v511_v9 }
  0x15   :  { %236 = vmatpush.bf16.msra.mxu0 %v37_v13 }
  0x80   :  { %v87_v15 = vpop.f32.mrf.mxu0 }
  0x81   :  { %v527_v16 = vadd.f32 %v524_v14, %v87_v15 }
  0x83   :  { %415 = vtanh.f32 %v527_v16 }
  0x88   :  { %v90_v39 = vpop.f32.mrf.mxu0 }
  0x89   :  { %v416_v17 = vpop.eup %415 }
  0x8a   :  { %v94_v18 = vpack.c.bf16 %v416_v17, %v416_v17 }
  0x8c   :  { %397 = vmatmul.msk.bf16.vlgmr.msra.gmra.mxu1 %vm98_vm2, %v94_v18  ;;  %398 = vmatmul.msk.bf16.vlgmr.msra.gmra.mxu2 %vm98_vm2, %v94_v18 }
  0x8d   :  { %259 = vmatpush.bf16.msra.mxu1 %v50_v5  ;;  %275 = vmatpush.bf16.msra.mxu2 %v44_v22 }
  0x91   :  { %260 = vmatpush.bf16.msra.mxu1 %v49_v12  ;;  %276 = vmatpush.bf16.msra.mxu2 %v43_v25 }
 0x109   :  { %v111_v27 = vpop.f32.mrf.mxu1 }
 0x10a   :  { %v112_v28 = vadd.f32 %v552_v26, %v111_v27 }
 0x10c   :  { %417 = vtanh.f32 %v112_v28 }
 0x10f   :  { %v126_v29 = vpop.f32.mrf.mxu2 }
 0x110   :  { %v131_v30 = vrot.slane %v126_v29, 6 }
 0x111   :  { %v113_v31 = vpop.f32.mrf.mxu1 }
 0x112   :  { %v418_v32 = vpop.eup %417  ;;  %v133_v33 = vadd.f32 %v131_v30, %v527_v16 }
 0x113   :  { %v116_v34 = vpack.c.bf16 %v418_v32, %v418_v32 }
 0x114   :  { %419 = vtanh.f32 %v133_v33 }
 0x115   :  { %400 = vmatmul.msk.bf16.vlgmr.msrb.gmra.mxu0 %vm98_vm2, %v116_v34 }
 0x116   :  { %310 = vmatpush.bf16.msrb.mxu0 %v50_v5 }
 0x117   :  { %v128_v35 = vpop.f32.mrf.mxu2 }
 0x11a   :  { %v420_v36 = vpop.eup %419  ;;  %311 = vmatpush.bf16.msrb.mxu0 %v49_v12  ;;  %v350_v12 = vld [vmem:[%s606_s7 + $0x8] sm:$0xff] }
 0x11b   :  { %v135_v37 = vpack.c.bf16 %v420_v36, %v420_v36  ;;  %v414_v36 = vld [vmem:[%s607_s8] ss:$0 sm:$0xff] }
 0x11d   :  { %v137_v38 = vrot.slane %v135_v37, 1 }
 0x11f   :  { %399 = vmatmul.msk.bf16.vlgmr.msra.gmra.mxu3 %vm98_vm2, %v137_v38  ;;  %401 = vmatmul.msk.bf16.vlgmr.msrb.gmra.mxu1 %vm98_vm2, %v137_v38 }
 0x120   :  { %291 = vmatpush.bf16.msra.mxu3 %v511_v9  ;;  %326 = vmatpush.bf16.msrb.mxu1 %v44_v22 }
 0x124   :  { %292 = vmatpush.bf16.msra.mxu3 %v37_v13  ;;  %327 = vmatpush.bf16.msrb.mxu1 %v43_v25  ;;  %v349_v13 = vld [vmem:[%s606_s7] sm:$0xff] }
 0x192   :  { %v166_v40 = vpop.f32.mrf.mxu0 }
 0x19a   :  { %v168_v41 = vpop.f32.mrf.mxu0 }
 0x19c   :  { %v182_v42 = vpop.f32.mrf.mxu1 }
 0x19d   :  { %v187_v43 = vrot.slane %v182_v42, 4 }
 0x19f   :  { %v189_v44 = vadd.f32 %v187_v43, %v527_v16 }
 0x1a1   :  { %421 = vtanh.f32 %v189_v44 }
 0x1a2   :  { %v150_v45 = vpop.f32.mrf.mxu3 }
 0x1a3   :  { %v151_v46 = vadd.f32 %v552_v26, %v150_v45 }
 0x1a4   :  { %v184_v47 = vpop.f32.mrf.mxu1 }
 0x1a5   :  { %v170_v48 = vadd.f32 %v166_v40, %v151_v46 }
 0x1a7   :  { %v422_v49 = vpop.eup %421  ;;  %423 = vtanh.f32 %v170_v48 }
 0x1a8   :  { %v191_v50 = vpack.c.bf16 %v422_v49, %v422_v49 }
 0x1aa   :  { %v193_v51 = vrot.slane %v191_v50, 2  ;;  %v152_v52 = vpop.f32.mrf.mxu3 }
 0x1ac   :  { %402 = vmatmul.msk.bf16.vlgmr.msrb.gmra.mxu2 %vm98_vm2, %v193_v51  ;;  %404 = vmatmul.msk.bf16.vlgmr.msra.gmra.mxu0 %vm98_vm2, %v193_v51 }
 0x1ad   :  { %v424_v53 = vpop.eup %423  ;;  %375 = vmatpush.msrb.mxu2 %v352_v10 }
 0x1ae   :  { %v172_v54 = vpack.c.bf16 %v424_v53, %v424_v53  ;;  %v336_v3 = vrot.slane %v424_v53, 6 }
 0x1af   :  { %376 = vmatpush.msrb.mxu2 %v351_v11 }
 0x1b0   :  { %403 = vmatmul.msk.bf16.vlgmr.msrb.gmra.mxu3 %vm98_vm2, %v172_v54  ;;  %v345_v8 = vsel %vm344_vm3, %v418_v32, %v336_v3 }
 0x1b1   :  { %377 = vmatpush.msrb.mxu2 %v350_v12 }
 0x1b3   :  { %378 = vmatpush.msrb.mxu2 %v349_v13 }
 0x229   :  { %v238_v55 = vpop.f32.mrf.mxu0 }
 0x22a   :  { %v243_v56 = vrot.slane %v238_v55, 2 }
 0x22c   :  { %v245_v57 = vadd.f32 %v243_v56, %v527_v16  ;;  %v91_v16 = vadd.f32 %v524_v14, %v90_v39 }
 0x22e   :  { %425 = vtanh.f32 %v245_v57 }
 0x22f   :  { %v206_v58 = vpop.f32.mrf.mxu2 }
 0x230   :  { %v207_v60 = vadd.f32 %v552_v26, %v206_v58 }
 0x231   :  { %v240_v59 = vpop.f32.mrf.mxu0 }
 0x233   :  { %v222_v61 = vpop.f32.mrf.mxu3 }
 0x234   :  { %v426_v62 = vpop.eup %425  ;;  %v226_v63 = vadd.f32 %v222_v61, %v207_v60 }
 0x235   :  { %v247_v0 = vpack.c.bf16 %v426_v62, %v426_v62 }
 0x236   :  { %427 = vtanh.f32 %v226_v63 }
 0x237   :  { %v249_v1 = vrot.slane %v247_v0, 3  ;;  %v208_v2 = vpop.f32.mrf.mxu2 }
 0x239   :  { %405 = vmatmul.msk.bf16.vlgmr.msra.gmra.mxu1 %vm98_vm2, %v249_v1  ;;  %407 = vmatmul.msk.bf16.vlgmr.msra.gmra.mxu3 %vm98_vm2, %v249_v1 }
 0x23b   :  { %v224_v4 = vpop.f32.mrf.mxu3 }
 0x23c   :  { %v428_v5 = vpop.eup %427 }
 0x23d   :  { %v228_v6 = vpack.c.bf16 %v428_v5, %v428_v5  ;;  %v339_v7 = vrot.slane %v428_v5, 4 }
 0x23f   :  { %406 = vmatmul.msk.bf16.vlgmr.msra.gmra.mxu2 %vm98_vm2, %v228_v6  ;;  %v346_v9 = vsel %vm66_vm0, %v345_v8, %v339_v7 }
 0x2b6   :  { %v262_v15 = vpop.f32.mrf.mxu1 }
 0x2b7   :  { %v263_v20 = vadd.f32 %v552_v26, %v262_v15 }
 0x2bc   :  { %v294_v17 = vpop.f32.mrf.mxu3 }
 0x2bd   :  { %v298_v18 = vadd.f32 %v294_v17, %v91_v16 }
 0x2be   :  { %v264_v19 = vpop.f32.mrf.mxu1 }
 0x2bf   :  { %429 = vtanh.f32 %v298_v18 }
 0x2c2   :  { %v278_v21 = vpop.f32.mrf.mxu2 }
 0x2c3   :  { %v282_v22 = vadd.f32 %v278_v21, %v263_v20 }
 0x2c4   :  { %v296_v23 = vpop.f32.mrf.mxu3 }
 0x2c5   :  { %v430_v24 = vpop.eup %429  ;;  %431 = vtanh.f32 %v282_v22 }
 0x2c6   :  { %v300_v25 = vpack.c.bf16 %v430_v24, %v430_v24 }
 0x2c8   :  { %408 = vmatmul.msk.bf16.vlgmr.msrb.gmra.mxu0 %vm98_vm2, %v300_v25 }
 0x2ca   :  { %v280_v27 = vpop.f32.mrf.mxu2 }
 0x2cb   :  { %v432_v28 = vpop.eup %431 }
 0x2cc   :  { %v284_v29 = vpack.c.bf16 %v432_v28, %v432_v28  ;;  %v342_v30 = vrot.slane %v432_v28, 2 }
 0x2ce   :  { %409 = vmatmul.msk.bf16.vlgmr.msrb.gmra.mxu1 %vm98_vm2, %v284_v29  ;;  %v348_v14 = vsel %vm347_vm4, %v346_v9, %v342_v30 }
 0x2cf   :  { %410 = vmatmul.msk.f32.vlgmr.msrb.gmra.mxu2 %vm98_vm2, %v348_v14 }
 0x345   :  { %v313_v31 = vpop.f32.mrf.mxu0 }
 0x346   :  { %v314_v32 = vadd.f32 %v552_v26, %v313_v31 }
 0x34b   :  { %v329_v33 = vpop.f32.mrf.mxu1 }
 0x34c   :  { %v333_v34 = vadd.f32 %v329_v33, %v314_v32 }
 0x34d   :  { %v315_v35 = vpop.f32.mrf.mxu0 }
 0x34e   :  { %433 = vtanh.f32 %v333_v34 }
 0x352   :  { %v380_v37 = vpop.f32.mrf.mxu2 }
 0x353   :  { %v381_v38 = vadd.f32 %v414_v36, %v380_v37  ;;  %v331_v39 = vpop.f32.mrf.mxu1 }
 0x354   :  { %v434_v40 = vpop.eup %433 }
 0x355   :  { %387 = vst.msk [vmem:[%s608_s9] sm:$0xff] %vm386_vm5, %v381_v38  ;;  %411 = vmatmul.msk.f32.gmra.mxu2 %vm98_vm2, %v434_v40 }
 0x3d8   :  { %v383_v26 = vpop.f32.mrf.mxu2 }
 0x3d9   :  { %v384_v41 = vadd.f32 %v414_v36, %v383_v26 }
 0x3db   :  { %389 = vst.msk [vmem:[%s608_s9 + $0x8] sm:$0x3] %vm388_vm6, %v384_v41 }

</bundles_post_ra>
